<compile_context>
chip_gen: v7x
topology: tpu7x:2x2x1
jax: 0.10.0
libtpu: 0.0.40
codegen_flags: <defaults>
</compile_context>

<pallas_src>
import numpy as np
import jax
import jax.numpy as jnp
from jax.experimental import pallas as pl
from jax.experimental.pallas import tpu as pltpu

POOLED = 7    # RoIAlign pooled size; MaxPool2d(7) collapses it to 1x1
PPAD = 8      # per-RoI bin axis padded 7 -> 8 (row 7 duplicates row 6; max-safe)
H_BAND = 256  # stage-1 contraction band (multiple of 128 and 8)


# ----------------------------------------------------------------------------
# Per-RoI separable RoIAlign weights (torchvision semantics, aligned=True,
# spatial_scale=1, sampling_ratio=0 -> adaptive grid).
# ----------------------------------------------------------------------------
def _axis_weights(start, length, size, g_max):
    """(R, POOLED, size) weights W s.t. (W @ f) = per-bin sample mean along one axis."""
    start = start.astype(jnp.float32)
    length = length.astype(jnp.float32)
    bin_size = length / POOLED                                  # (R,)
    grid = jnp.maximum(jnp.ceil(length / POOLED), 1.0)          # sampling_ratio == 0

    ph = jnp.arange(POOLED, dtype=jnp.float32)                  # (7,)
    iy = jnp.arange(g_max, dtype=jnp.float32)                   # (G,)

    coord = (start[:, None, None]
             + ph[None, :, None] * bin_size[:, None, None]
             + (iy[None, None, :] + 0.5) * bin_size[:, None, None] / grid[:, None, None])
    valid = iy[None, None, :] < grid[:, None, None]             # (R,7,G)
    oob = (coord < -1.0) | (coord > size)                       # whole sample -> 0

    c = jnp.maximum(coord, 0.0)
    low = jnp.floor(c)
    at_edge = low >= (size - 1)
    low = jnp.where(at_edge, float(size - 1), low)
    frac = jnp.where(at_edge, 0.0, c - low)                     # weight on "high" neighbor
    low_i = low.astype(jnp.int32)
    high_i = jnp.minimum(low_i + 1, size - 1)

    idx = jnp.arange(size, dtype=jnp.int32)
    w = ((1.0 - frac)[..., None] * (idx == low_i[..., None]).astype(jnp.float32)
         + frac[..., None] * (idx == high_i[..., None]).astype(jnp.float32))   # (R,7,G,size)
    w = w * (valid & (~oob))[..., None].astype(jnp.float32)
    return w.sum(axis=2) / grid[:, None, None]                  # (R,7,size)


# ----------------------------------------------------------------------------
# Kernel: grid = (image, H-band).
#   stage 1 (per band): t[(b,p),(c,w)] += wy[(b,p),h] @ x[h,(c,w)]   (bf16 MXU)
#   stage 2 (last band, per channel): bins[b,p,q] = sum_w t_c[b,p,w]*wx[b,q,w]
#   out[b,c] = max_{p,q} bins[b,p,q]                                 (MaxPool2d(7))
# ----------------------------------------------------------------------------
def _roi_maxpool_kernel(wy_ref, wx_ref, x_ref, o_ref, t_acc):
    # wy_ref: (1, B*PPAD, band_h) bf16   per-RoI row (H-axis) weights, band slice
    # wx_ref: (1, B, PPAD, W)     f32    per-RoI column (W-axis) weights
    # x_ref : (1, band_h, C*W)    bf16   feature band, lanes = fused C*W (dense)
    # o_ref : (1, B, C)           f32    pooled output per RoI
    # t_acc : (B*PPAD, C*W)       f32    stage-1 accumulator across H bands
    h = pl.program_id(1)

    # Stage 1: single lane-dense matmul, no broadcasts, f32 accumulation.
    part = jnp.dot(wy_ref[0], x_ref[0], preferred_element_type=jnp.float32)

    @pl.when(h == 0)
    def _():
        t_acc[...] = part

    @pl.when(h > 0)
    def _():
        t_acc[...] = t_acc[...] + part

    # Stage 2 + max pool only once the H contraction is complete.
    @pl.when(h == pl.num_programs(1) - 1)
    def _():
        B = o_ref.shape[1]
        C = o_ref.shape[2]
        W = wx_ref.shape[3]
        wx = wx_ref[0]                                  # (B, PPAD, W) f32
        for c in range(C):
            # Static lane-window slice of the accumulator: (B*PPAD, W).
            tc = t_acc[:, c * W:(c + 1) * W]
            tc3 = tc.reshape(B, PPAD, W)                # tile-aligned sublane split
            # Batched over RoIs, contracting the minor W dim (no broadcast of wx).
            bins = jnp.einsum('bpw,bqw->bpq', tc3, wx,
                              preferred_element_type=jnp.float32)   # (B, 8, 8)
            # Padded bin rows/cols duplicate real bins, so a plain max is exact.
            pooled = bins.max(axis=2).max(axis=1, keepdims=True)    # (B, 1)
            o_ref[0, :, pl.ds(c, 1)] = pooled           # bounded live range per c


def box_roi(box_list):
    rois_list = []
    for img_id, bboxes in enumerate(box_list):
        img_inds = jnp.full((bboxes.shape[0], 1), img_id, dtype=bboxes.dtype)
        rois_list.append(jnp.concatenate([img_inds, bboxes[:, :4]], axis=-1))
    return jnp.concatenate(rois_list, axis=0)


def sdmg_neck(x_nchw, box_list):
    N, C, H, W = x_nchw.shape
    R_per_img = [int(b.shape[0]) for b in box_list]
    B = max(R_per_img)                              # RoIs processed per image step

    rois = box_roi(box_list)                        # (R, 5): [img_id, x1, y1, x2, y2]
    start_w = rois[:, 1] - 0.5                      # aligned=True, spatial_scale=1
    start_h = rois[:, 2] - 0.5
    roi_w = rois[:, 3] - rois[:, 1]
    roi_h = rois[:, 4] - rois[:, 2]

    # Size the per-bin sample grid from the actual max RoI extent so RoIs larger
    # than the feature map no longer silently drop samples.
    roi_w_np = np.asarray(roi_w, np.float32)
    roi_h_np = np.asarray(roi_h, np.float32)
    assert float(roi_w_np.min()) > 0 and float(roi_h_np.min()) > 0, \
        "degenerate (zero-extent) RoIs are not supported"
    gy = max(1, int(np.ceil(float(roi_h_np.max()) / POOLED)))
    gx = max(1, int(np.ceil(float(roi_w_np.max()) / POOLED)))

    wy = _axis_weights(start_h, roi_h, H, gy)               # (R, 7, H)
    wx = _axis_weights(start_w, roi_w, W, gx)               # (R, 7, W)
    # Pad the bin axis 7 -> 8 by duplicating the last bin (max-pool safe).
    wy = jnp.concatenate([wy, wy[:, -1:, :]], axis=1)       # (R, 8, H)
    wx = jnp.concatenate([wx, wx[:, -1:, :]], axis=1)       # (R, 8, W)

    # Group RoIs per image; pad each image to B RoIs with all-zero weights
    # (single packed build, no sequential full-array .at[].set copies).
    ys, xs = [], []
    off = 0
    for r in R_per_img:
        py, px = wy[off:off + r], wx[off:off + r]
        if r < B:
            py = jnp.concatenate([py, jnp.zeros((B - r, PPAD, H), jnp.float32)], 0)
            px = jnp.concatenate([px, jnp.zeros((B - r, PPAD, W), jnp.float32)], 0)
        ys.append(py)
        xs.append(px)
        off += r
    wy_img = jnp.stack(ys, 0)                               # (N, B, 8, H)
    wx_img = jnp.stack(xs, 0)                               # (N, B, 8, W)

    # H banding for stage 1 (keeps the per-step working set independent of H).
    if H <= H_BAND:
        band_h, num_bands, H_pad = H, 1, H
    else:
        band_h = H_BAND
        num_bands = -(-H // H_BAND)
        H_pad = num_bands * H_BAND

    # Feature layout (N, H, C*W): lanes = fused C*W (dense), bands slice the
    # second-to-last dim.  Zero-padding H is exact (it is the contraction dim).
    x2d = jnp.transpose(x_nchw, (0, 2, 1, 3)).reshape(N, H, C * W)
    if H_pad != H:
        x2d = jnp.pad(x2d, ((0, 0), (0, H_pad - H), (0, 0)))
        wy_img = jnp.pad(wy_img, ((0, 0), (0, 0), (0, 0), (0, H_pad - H)))
    x2d = x2d.astype(jnp.bfloat16)
    wy_stack = wy_img.reshape(N, B * PPAD, H_pad).astype(jnp.bfloat16)

    # Scoped-VMEM budget from the actual blocks (double-buffered) + scratch.
    blocks = (2 * (B * PPAD) * band_h * 2        # wy blocks (bf16)
              + 2 * band_h * (C * W) * 2         # feature blocks (bf16)
              + 2 * B * PPAD * W * 4             # wx blocks (f32)
              + 2 * B * C * 4                    # output blocks (f32)
              + (B * PPAD) * (C * W) * 4)        # stage-1 accumulator scratch
    vmem_limit = int(max(16 * 2**20, min(2 * blocks + (2 << 20), 100 * 2**20)))

    out = pl.pallas_call(
        _roi_maxpool_kernel,
        out_shape=jax.ShapeDtypeStruct((N, B, C), jnp.float32),
        grid=(N, num_bands),
        in_specs=[
            pl.BlockSpec((1, B * PPAD, band_h), lambda i, h: (i, 0, h)),
            pl.BlockSpec((1, B, PPAD, W), lambda i, h: (i, 0, 0, 0)),
            pl.BlockSpec((1, band_h, C * W), lambda i, h: (i, h, 0)),
        ],
        out_specs=pl.BlockSpec((1, B, C), lambda i, h: (i, 0, 0)),
        scratch_shapes=[pltpu.VMEM((B * PPAD, C * W), jnp.float32)],
        compiler_params=pltpu.CompilerParams(
            dimension_semantics=("parallel", "arbitrary"),
            vmem_limit_bytes=vmem_limit),
    )(wy_stack, wx_img, x2d)

    # Drop per-image RoI padding (all-zero rows) and restore box_roi ordering.
    pieces = [out[i, :r] for i, r in enumerate(R_per_img)]
    return jnp.concatenate(pieces, axis=0)          # (R, C)


# ----------------------------------------------------------------------------
# Independent numpy reference (direct RoIAlign loops + max pool).
# ----------------------------------------------------------------------------
def _bilinear(feat, H, W, y, x):
    if y < -1.0 or y > H or x < -1.0 or x > W:
        return np.zeros(feat.shape[0], np.float32)
    y = max(y, 0.0); x = max(x, 0.0)
    yl, xl = int(y), int(x)
    if yl >= H - 1:
        yh = yl = H - 1; y = float(yl)
    else:
        yh = yl + 1
    if xl >= W - 1:
        xh = xl = W - 1; x = float(xl)
    else:
        xh = xl + 1
    ly, lx = y - yl, x - xl
    hy, hx = 1.0 - ly, 1.0 - lx
    return (hy * hx * feat[:, yl, xl] + hy * lx * feat[:, yl, xh]
            + ly * hx * feat[:, yh, xl] + ly * lx * feat[:, yh, xh])


def reference(x_nchw, box_list):
    x_np = np.asarray(x_nchw, dtype=np.float32)
    _, C, H, W = x_np.shape
    outs = []
    for img_id, boxes in enumerate(box_list):
        for b in np.asarray(boxes, dtype=np.float32):
            x1, y1, x2, y2 = [float(v) for v in b[:4]]
            sw, sh = x1 - 0.5, y1 - 0.5
            rw, rh = x2 - x1, y2 - y1
            bw, bh = rw / POOLED, rh / POOLED
            gw, gh = int(np.ceil(rw / POOLED)), int(np.ceil(rh / POOLED))
            count = max(gw * gh, 1)
            pooled = np.zeros((C, POOLED, POOLED), np.float32)
            for ph in range(POOLED):
                for pw in range(POOLED):
                    acc = np.zeros(C, np.float32)
                    for iy in range(gh):
                        yy = sh + ph * bh + (iy + 0.5) * bh / gh
                        for ix in range(gw):
                            xx = sw + pw * bw + (ix + 0.5) * bw / gw
                            acc += _bilinear(x_np[img_id], H, W, yy, xx)
                    pooled[:, ph, pw] = acc / count
            outs.append(pooled.reshape(C, -1).max(axis=1))
    return np.stack(outs, axis=0)


if __name__ == "__main__":
    N, C, H, W = 2, 4, 16, 16
    key = jax.random.PRNGKey(0)
    kx, kb0, kb1 = jax.random.split(key, 3)
    x = jax.random.normal(kx, (N, C, H, W), jnp.float32)

    def make_boxes(k, n):
        ka, kb = jax.random.split(k)
        xy1 = jax.random.uniform(ka, (n, 2), minval=0.0, maxval=9.0)
        wh = jax.random.uniform(kb, (n, 2), minval=2.0, maxval=6.0)
        return jnp.concatenate([xy1, xy1 + wh], axis=-1)  # (n, 4): x1, y1, x2, y2

    gt_boxes = [make_boxes(kb0, 3), make_boxes(kb1, 3)]   # R = 6 RoIs total

    out = jax.block_until_ready(sdmg_neck(x, gt_boxes))   # (6, 4)
    ref = reference(x, gt_boxes)
    # bf16 MXU operands with f32 accumulation -> bf16-appropriate tolerance.
    np.testing.assert_allclose(np.asarray(out), ref, rtol=2e-2, atol=2e-2)
    print("KERNEL_OK")
</pallas_src>

<mosaic_0001>
module attributes {stable_mosaic.version = 11 : i64} {
  func.func @_roi_maxpool_kernel(%arg0: i32, %arg1: i32, %arg2: memref<1x24x16xbf16, #tpu.memory_space<vmem>>, %arg3: memref<1x3x8x16xf32, #tpu.memory_space<vmem>>, %arg4: memref<1x16x64xbf16, #tpu.memory_space<vmem>>, %arg5: memref<1x3x4xf32, #tpu.memory_space<vmem>>, %arg6: memref<24x64xf32, #tpu.memory_space<vmem>>) attributes {dimension_semantics = [#tpu.dimension_semantics<parallel>, #tpu.dimension_semantics<arbitrary>], iteration_bounds = array<i64: 2, 1>, scalar_prefetch = 0 : i64, scratch_operands = 1 : i64, tpu.core_type = #tpu.core_type<tc>, window_params = [{transform_indices = @transform_0, window_bounds = array<i64: 1, 24, 16>}, {transform_indices = @transform_1, window_bounds = array<i64: 1, 3, 8, 16>}, {transform_indices = @transform_2, window_bounds = array<i64: 1, 16, 64>}, {transform_indices = @transform_3, window_bounds = array<i64: 1, 3, 4>}]} {
    %c0 = arith.constant 0 : index
    %c0_0 = arith.constant 0 : index
    %c0_1 = arith.constant 0 : index
    %0 = vector.load %arg2[%c0, %c0_0, %c0_1] : memref<1x24x16xbf16, #tpu.memory_space<vmem>>, vector<1x24x16xbf16>
    %1 = vector.shape_cast %0 : vector<1x24x16xbf16> to vector<24x16xbf16>
    %c0_2 = arith.constant 0 : index
    %c0_3 = arith.constant 0 : index
    %c0_4 = arith.constant 0 : index
    %2 = vector.load %arg4[%c0_2, %c0_3, %c0_4] : memref<1x16x64xbf16, #tpu.memory_space<vmem>>, vector<1x16x64xbf16>
    %3 = vector.shape_cast %2 : vector<1x16x64xbf16> to vector<16x64xbf16>
    %cst = arith.constant dense<0.000000e+00> : vector<24x64xf32>
    %4 = tpu.matmul %1, %3, %cst {dimension_numbers = #tpu.dot_dimension_numbers<[1], [0], [0], [1], [0, 0, 1, 1], [], []>} : vector<24x16xbf16>, vector<16x64xbf16>, vector<24x64xf32> -> vector<24x64xf32>
    %c0_i32 = arith.constant 0 : i32
    %5 = arith.cmpi eq, %arg1, %c0_i32 : i32
    %6 = arith.extui %5 : i1 to i32
    %c0_i32_5 = arith.constant 0 : i32
    %7 = arith.cmpi ne, %6, %c0_i32_5 : i32
    scf.if %7 {
      %c0_10 = arith.constant 0 : index
      %c0_11 = arith.constant 0 : index
      %14 = vector.load %arg6[%c0_10, %c0_11] : memref<24x64xf32, #tpu.memory_space<vmem>>, vector<24x64xf32>
      tpu.vector_store %arg6[%c0_10, %c0_11], %4 {strides = array<i32>} : memref<24x64xf32, #tpu.memory_space<vmem>>, vector<24x64xf32>,
    } else {
    }
    %c0_i32_6 = arith.constant 0 : i32
    %8 = arith.cmpi sgt, %arg1, %c0_i32_6 : i32
    %9 = arith.extui %8 : i1 to i32
    %c0_i32_7 = arith.constant 0 : i32
    %10 = arith.cmpi ne, %9, %c0_i32_7 : i32
    scf.if %10 {
      %c0_10 = arith.constant 0 : index
      %c0_11 = arith.constant 0 : index
      %14 = vector.load %arg6[%c0_10, %c0_11] : memref<24x64xf32, #tpu.memory_space<vmem>>, vector<24x64xf32>
      %15 = arith.addf %14, %4 : vector<24x64xf32>
      %c0_12 = arith.constant 0 : index
      %c0_13 = arith.constant 0 : index
      %16 = vector.load %arg6[%c0_12, %c0_13] : memref<24x64xf32, #tpu.memory_space<vmem>>, vector<24x64xf32>
      tpu.vector_store %arg6[%c0_12, %c0_13], %15 {strides = array<i32>} : memref<24x64xf32, #tpu.memory_space<vmem>>, vector<24x64xf32>,
    } else {
    }
    %c0_i32_8 = arith.constant 0 : i32
    %11 = arith.cmpi eq, %arg1, %c0_i32_8 : i32
    %12 = arith.extui %11 : i1 to i32
    %c0_i32_9 = arith.constant 0 : i32
    %13 = arith.cmpi ne, %12, %c0_i32_9 : i32
    scf.if %13 {
      %c0_10 = arith.constant 0 : index
      %c0_11 = arith.constant 0 : index
      %c0_12 = arith.constant 0 : index
      %c0_13 = arith.constant 0 : index
      %14 = vector.load %arg3[%c0_10, %c0_11, %c0_12, %c0_13] : memref<1x3x8x16xf32, #tpu.memory_space<vmem>>, vector<1x3x8x16xf32>
      %15 = vector.shape_cast %14 : vector<1x3x8x16xf32> to vector<3x8x16xf32>
      %c0_14 = arith.constant 0 : index
      %c0_15 = arith.constant 0 : index
      %16 = vector.load %arg6[%c0_14, %c0_15] : memref<24x64xf32, #tpu.memory_space<vmem>>, vector<24x16xf32>
      %17 = vector.shape_cast %16 : vector<24x16xf32> to vector<3x8x16xf32>
      "tpu.trace_start"() <{level = 10 : i32, message = "bpw,bqw->bpq"}> : () -> ()
      %cst_16 = arith.constant dense<0.000000e+00> : vector<3x8x8xf32>
      %18 = tpu.matmul %17, %15, %cst_16 {dimension_numbers = #tpu.dot_dimension_numbers<[2], [2], [1], [1], [0, 0, 0, 1, 1, 1], [0], [0]>} : vector<3x8x16xf32>, vector<3x8x16xf32>, vector<3x8x8xf32> -> vector<3x8x8xf32>
      "tpu.trace_stop"() : () -> ()
      %cst_17 = arith.constant dense<0xFF800000> : vector<3x8xf32>
      %19 = vector.multi_reduction <maximumf>, %18, %cst_17 [2] : vector<3x8x8xf32> to vector<3x8xf32>
      %cst_18 = arith.constant dense<0xFF800000> : vector<3xf32>
      %20 = vector.multi_reduction <maximumf>, %19, %cst_18 [1] : vector<3x8xf32> to vector<3xf32>
      %21 = vector.shape_cast %20 : vector<3xf32> to vector<3x1xf32>
      %c0_19 = arith.constant 0 : index
      %c0_20 = arith.constant 0 : index
      %c0_21 = arith.constant 0 : index
      %22 = vector.load %arg5[%c0_19, %c0_20, %c0_21] : memref<1x3x4xf32, #tpu.memory_space<vmem>>, vector<1x3x1xf32>
      %23 = vector.shape_cast %22 : vector<1x3x1xf32> to vector<3x1xf32>
      %24 = vector.shape_cast %21 : vector<3x1xf32> to vector<1x3x1xf32>
      tpu.vector_store %arg5[%c0_19, %c0_20, %c0_21], %24 {strides = array<i32>} : memref<1x3x4xf32, #tpu.memory_space<vmem>>, vector<1x3x1xf32>,
      %c0_22 = arith.constant 0 : index
      %c16 = arith.constant 16 : index
      %25 = vector.load %arg6[%c0_22, %c16] : memref<24x64xf32, #tpu.memory_space<vmem>>, vector<24x16xf32>
      %26 = vector.shape_cast %25 : vector<24x16xf32> to vector<3x8x16xf32>
      "tpu.trace_start"() <{level = 10 : i32, message = "bpw,bqw->bpq"}> : () -> ()
      %cst_23 = arith.constant dense<0.000000e+00> : vector<3x8x8xf32>
      %27 = tpu.matmul %26, %15, %cst_23 {dimension_numbers = #tpu.dot_dimension_numbers<[2], [2], [1], [1], [0, 0, 0, 1, 1, 1], [0], [0]>} : vector<3x8x16xf32>, vector<3x8x16xf32>, vector<3x8x8xf32> -> vector<3x8x8xf32>
      "tpu.trace_stop"() : () -> ()
      %cst_24 = arith.constant dense<0xFF800000> : vector<3x8xf32>
      %28 = vector.multi_reduction <maximumf>, %27, %cst_24 [2] : vector<3x8x8xf32> to vector<3x8xf32>
      %cst_25 = arith.constant dense<0xFF800000> : vector<3xf32>
      %29 = vector.multi_reduction <maximumf>, %28, %cst_25 [1] : vector<3x8xf32> to vector<3xf32>
      %30 = vector.shape_cast %29 : vector<3xf32> to vector<3x1xf32>
      %c0_26 = arith.constant 0 : index
      %c0_27 = arith.constant 0 : index
      %c1 = arith.constant 1 : index
      %31 = vector.load %arg5[%c0_26, %c0_27, %c1] : memref<1x3x4xf32, #tpu.memory_space<vmem>>, vector<1x3x1xf32>
      %32 = vector.shape_cast %31 : vector<1x3x1xf32> to vector<3x1xf32>
      %33 = vector.shape_cast %30 : vector<3x1xf32> to vector<1x3x1xf32>
      tpu.vector_store %arg5[%c0_26, %c0_27, %c1], %33 {strides = array<i32>} : memref<1x3x4xf32, #tpu.memory_space<vmem>>, vector<1x3x1xf32>,
      %c0_28 = arith.constant 0 : index
      %c32 = arith.constant 32 : index
      %34 = vector.load %arg6[%c0_28, %c32] : memref<24x64xf32, #tpu.memory_space<vmem>>, vector<24x16xf32>
      %35 = vector.shape_cast %34 : vector<24x16xf32> to vector<3x8x16xf32>
      "tpu.trace_start"() <{level = 10 : i32, message = "bpw,bqw->bpq"}> : () -> ()
      %cst_29 = arith.constant dense<0.000000e+00> : vector<3x8x8xf32>
      %36 = tpu.matmul %35, %15, %cst_29 {dimension_numbers = #tpu.dot_dimension_numbers<[2], [2], [1], [1], [0, 0, 0, 1, 1, 1], [0], [0]>} : vector<3x8x16xf32>, vector<3x8x16xf32>, vector<3x8x8xf32> -> vector<3x8x8xf32>
      "tpu.trace_stop"() : () -> ()
      %cst_30 = arith.constant dense<0xFF800000> : vector<3x8xf32>
      %37 = vector.multi_reduction <maximumf>, %36, %cst_30 [2] : vector<3x8x8xf32> to vector<3x8xf32>
      %cst_31 = arith.constant dense<0xFF800000> : vector<3xf32>
      %38 = vector.multi_reduction <maximumf>, %37, %cst_31 [1] : vector<3x8xf32> to vector<3xf32>
      %39 = vector.shape_cast %38 : vector<3xf32> to vector<3x1xf32>
      %c0_32 = arith.constant 0 : index
      %c0_33 = arith.constant 0 : index
      %c2 = arith.constant 2 : index
      %40 = vector.load %arg5[%c0_32, %c0_33, %c2] : memref<1x3x4xf32, #tpu.memory_space<vmem>>, vector<1x3x1xf32>
      %41 = vector.shape_cast %40 : vector<1x3x1xf32> to vector<3x1xf32>
      %42 = vector.shape_cast %39 : vector<3x1xf32> to vector<1x3x1xf32>
      tpu.vector_store %arg5[%c0_32, %c0_33, %c2], %42 {strides = array<i32>} : memref<1x3x4xf32, #tpu.memory_space<vmem>>, vector<1x3x1xf32>,
      %c0_34 = arith.constant 0 : index
      %c48 = arith.constant 48 : index
      %43 = vector.load %arg6[%c0_34, %c48] : memref<24x64xf32, #tpu.memory_space<vmem>>, vector<24x16xf32>
      %44 = vector.shape_cast %43 : vector<24x16xf32> to vector<3x8x16xf32>
      "tpu.trace_start"() <{level = 10 : i32, message = "bpw,bqw->bpq"}> : () -> ()
      %cst_35 = arith.constant dense<0.000000e+00> : vector<3x8x8xf32>
      %45 = tpu.matmul %44, %15, %cst_35 {dimension_numbers = #tpu.dot_dimension_numbers<[2], [2], [1], [1], [0, 0, 0, 1, 1, 1], [0], [0]>} : vector<3x8x16xf32>, vector<3x8x16xf32>, vector<3x8x8xf32> -> vector<3x8x8xf32>
      "tpu.trace_stop"() : () -> ()
      %cst_36 = arith.constant dense<0xFF800000> : vector<3x8xf32>
      %46 = vector.multi_reduction <maximumf>, %45, %cst_36 [2] : vector<3x8x8xf32> to vector<3x8xf32>
      %cst_37 = arith.constant dense<0xFF800000> : vector<3xf32>
      %47 = vector.multi_reduction <maximumf>, %46, %cst_37 [1] : vector<3x8xf32> to vector<3xf32>
      %48 = vector.shape_cast %47 : vector<3xf32> to vector<3x1xf32>
      %c0_38 = arith.constant 0 : index
      %c0_39 = arith.constant 0 : index
      %c3 = arith.constant 3 : index
      %49 = vector.load %arg5[%c0_38, %c0_39, %c3] : memref<1x3x4xf32, #tpu.memory_space<vmem>>, vector<1x3x1xf32>
      %50 = vector.shape_cast %49 : vector<1x3x1xf32> to vector<3x1xf32>
      %51 = vector.shape_cast %48 : vector<3x1xf32> to vector<1x3x1xf32>
      tpu.vector_store %arg5[%c0_38, %c0_39, %c3], %51 {strides = array<i32>} : memref<1x3x4xf32, #tpu.memory_space<vmem>>, vector<1x3x1xf32>,
    } else {
    }
    return
  }
  func.func @transform_0(%arg0: i32, %arg1: i32) -> (i32, i32, i32) {
    %c0_i32 = arith.constant 0 : i32
    %c0_i32_0 = arith.constant 0 : i32
    return %arg0, %c0_i32, %arg1 : i32, i32, i32
  }
  func.func @transform_1(%arg0: i32, %arg1: i32) -> (i32, i32, i32, i32) {
    %c0_i32 = arith.constant 0 : i32
    %c0_i32_0 = arith.constant 0 : i32
    %c0_i32_1 = arith.constant 0 : i32
    %c0_i32_2 = arith.constant 0 : i32
    return %arg0, %c0_i32, %c0_i32_0, %c0_i32_1 : i32, i32, i32, i32
  }
  func.func @transform_2(%arg0: i32, %arg1: i32) -> (i32, i32, i32) {
    %c0_i32 = arith.constant 0 : i32
    %c0_i32_0 = arith.constant 0 : i32
    return %arg0, %arg1, %c0_i32 : i32, i32, i32
  }
  func.func @transform_3(%arg0: i32, %arg1: i32) -> (i32, i32, i32) {
    %c0_i32 = arith.constant 0 : i32
    %c0_i32_0 = arith.constant 0 : i32
    %c0_i32_1 = arith.constant 0 : i32
    return %arg0, %c0_i32, %c0_i32_0 : i32, i32, i32
  }
}

</mosaic_0001>

<bundles_post_ra>
// kernel: tpu_custom_call.1
= control target key start
LH: loop header
LB: loop body
LE: loop exit
PB: predicated region body
PF: predicated region fallthrough
CT: control target
= control target key end

     0   :  { %8 = vsyncpa [#allocation4], 0  ;;  %s2075_s0 = inlined_call_operand.vmem [shape: bf16[2,24,16], index: 0, kind: input, shape index: {}]   ;;  %s2076_s1 = inlined_call_operand.hbm [shape: f32[2,3,8,16], index: 1, kind: input, shape index: {}]   ;;  %s2077_s2 = inlined_call_operand.vmem [shape: bf16[2,16,64], index: 2, kind: input, shape index: {}]   ;;  %s2078_s3 = inlined_call_operand.vmem [shape: f32[2,3,4], index: 3, kind: output, shape index: {}]  }
   0x1   :  { %10 = vsyncpa [#allocation4 + $0x1], 0  ;;  %s1843_s12 = smov 0   ;;  %s1845_s13 = smov 0  }
   0x2   :  { %s1847_s14 = smov 0   ;;  %s1849_s15 = smov 0  }
   0x3   :  { %s1851_s16 = smov 0   ;;  %s1853_s17 = smov 0  }
   0x4 LB: > { %s1529_s18 = sadd.s32 4294967295, %s1813_s17   ;;  %s28_s19 = sadd.s32 1, %s1809_s16  ;;  %s1813_s17 = sphi %s1853_s17, %s16_s17   ;;  %s1809_s16 = sphi %s1851_s16, %s2085_s16   ;;  %s1805_s15 = sphi %s1849_s15, %s2084_s15   ;;  %s1801_s14 = sphi %s1847_s14, %s2083_s14   ;;  %s1797_s13 = sphi %s1845_s13, %s2082_s13   ;;  %s1793_s12 = sphi %s1843_s12, %s2081_s12  }
   0x5   : > { %p30_p0 = scmp.ge.s32.totalorder %s28_s19, 2  ;;  %s63_s20 = sadd.s32 1, %s1801_s14 }
   0x6   : > { %p70_p1 = scmp.ne.s32.totalorder %s1801_s14, %s1797_s13  ;;  %p71_p2 = scmp.eq.s32.totalorder %s1813_s17, 0 }
   0x7   : > { %s2087_s19 = smov (%p30_p0, %s28_s19), 0  ;;  %p76_p4 = scmp.ne.s32.totalorder %s1797_s13, %s1793_s12 }
   0x8   : > { %p72_p3 = por %p71_p2, %p70_p1  ;;  %s60_s21 = ssub.s32 %s1809_s16, %s2087_s19 }
   0x9   : > { %p77_p5 = scmp.eq.s32.totalorder %s1529_s18, 0  ;;  %p61_p6 = scmp.eq.s32.totalorder %s60_s21, 0 }
   0xa   : > { %p1674_p8 = scmp.lt.s32.totalorder %s1813_s17, 2  ;;  %s165_s24 = sand.u32 1, %s1801_s14  }
   0xb   : > { %p1882_p7 = por %p77_p5, %p76_p4  ;;  %s1665_s25 = smul.u32 384, %s1809_s16 }
   0xc   : > { %s1888_s23 = scalar_select %p61_p6, %s1801_s14, %s63_s20  }
   0xd   : > { %s1664_s26 = smul.u32 24, %s165_s24  ;;  %s1895_s29 = scalar_lea.hbm %s2076_s1, %s1665_s25 }
   0xe   : > { %p1897_p9 = pnand %p1674_p8, %p72_p3  ;;  %s1903_s6 = scalar_lea.sflag [#allocation4], %s165_s24 }
   0xf   : > { %s169_s4 = scalar_lea.vmem [#allocation3], %s1664_s26  ;;  %s1733_s7 = scalar_lea.hbm %s1895_s29, 384 }
  0x10   : > { %s176_s5 = sshll.u32 %s169_s4, 4  ;;  %p1734_p10 = scmp.ne.s32.totalorder %s1895_s29, %s1733_s7  ;;  %s1901_s5 = int_to_ptr.vmem [resolvable:$true] %s176_s5 }
  0x11   : > { %p1735_p11 = pneg %p1897_p9  ;;  %s1738_s10 = scalar_lea.hbm %s2076_s1, 768 }
  0x12   : > { %p1739_p0 = scmp.lt.u32.totalorder %s1895_s29, %s2076_s1  ;;  %p1740_p1 = scmp.lt.u32.totalorder %s1738_s10, %s1733_s7 }
  0x13   : > { %p1736_p12 = pnand %p1735_p11, %p1734_p10  ;;  %p1742_p3 = scmp.lt.u32.totalorder %s1733_s7, %s1895_s29 }
  0x14   : > { %p1741_p2 = por %p1740_p1, %p1739_p0 }
  0x15   : > { %p1737_p13 = pneg %p1736_p12 }
  0x16   : > { %p1743_p4 = por %p1742_p3, %p1741_p2 }
  0x18   : > { %p1744_p5 = pnand %p1743_p4, %p1737_p13 }
  0x1a   : > { %1747 = shalt.err (!%p1744_p5)
}
  0x1b   : > { %s1748_s18 = scalar_lea.vmem %s1901_s5, 384  ;;  %s1815_s20 = smov [#allocation3]  }
  0x1c   : > { %p1749_p6 = scmp.ne.s32.totalorder %s1901_s5, %s1748_s18  ;;  %s1753_s21 = sshll.u32 %s1815_s20, 4  ;;  %s1754_s21 = int_to_ptr.vmem [resolvable:$false] %s1753_s21 }
  0x1d   : > { %s1755_s24 = scalar_lea.vmem %s1754_s21, 768  ;;  %p1756_p12 = scmp.lt.s32.totalorder %s1901_s5, %s1754_s21 }
  0x1e   : > { %p1751_p8 = pnand %p1749_p6, %p1735_p11  ;;  %p1757_p0 = scmp.lt.s32.totalorder %s1755_s24, %s1748_s18 }
  0x20   : > { %p1752_p10 = pneg %p1751_p8  ;;  %p1758_p1 = por %p1757_p0, %p1756_p12 }
  0x22   : > { %p1759_p2 = pnand %p1758_p1, %p1752_p10 }
  0x24   : > { %1762 = shalt.err (!%p1759_p2)
}
  0x25   : > { %s1816_s25 = smov 128   ;;  %s1817_s26 = smov 8  }
  0x26   : > { %1673 = dma.hbm_to_vmem [thread:$0]  (!%p1897_p9), %s1895_s29, 384, %s1901_s5, %s1903_s6, %s1816_s25, %s1816_s25, %s1817_s26  }
  0x27   : > { %p1534_p11 = scmp.ge.s32.totalorder %s1813_s17, 1  ;;  %p197_p13 = scmp.lt.s32.totalorder %s1813_s17, 3 }
  0x29   : > { %p198_p3 = pnand %p1534_p11, %p197_p13 }
  0x2a   : > { %s203_s27 = sand.u32 (!%p198_p3), 1, %s1797_s13  }
  0x2b   : > { %201 = sbr.rel (%p198_p3) target bundleno = 916 (0x394), region = 32  ;;  %s204_s4 = scalar_lea.sflag (!%p198_p3), [#allocation4], %s203_s27 }
  0x2c   : > { %s1666_s28 = smul.u32 (!%p198_p3), 24, %s203_s27 }
  0x2e   : > { %s1934_s7 = scalar_lea.vmem (!%p198_p3), [#allocation3], %s1666_s28 }
  0x32   : > { %1788 = dma.done.wait (%p1882_p7), %s204_s4, 384  }
  0x33   : > { %1790 = vsyncadd (%p1882_p7), %s204_s4, 4294966912  ;;  %p246_p9 = scmp.lt.s32.totalorder %s1805_s15, 1  ;;  %vm288_vm0 = vcmask 130048   ;;  %v1955_v3 = vld [vmem:[%s1934_s7 + $0x10] sm:$0xff]  ;;  %v1958_v4 = vld [vmem:[%s1934_s7] sm:$0xff]  ;;  %v1818_v5 = vmov 0.0   ;;  %v615_v59 = vlaneseq }
  0x34   : > { %1604 = vmatprep.subr.mxu1 %v1818_v5  ;;  %vm1819_vm1 = vmmov 0   ;;  %vm347_vm2 = vcmask 523264   ;;  %v369_v11 = vld [vmem:[%s1934_s7 + $0x8] sm:$0xff]  ;;  %s1820_s11 = smov 112   ;;  %s1821_s12 = smov 96   ;;  %vm602_vm3 = vcmask 64512  }
  0x35   : > { %s2089_s15 = smov (!%p246_p9, %s1805_s15), 1  ;;  %1605 = vmatpush3.xpose.msk.msra.mxu1 %vm288_vm0, %v1958_v4  ;;  %1606 = vmatprep.mubr.msk.f32.mxu1 %vm1819_vm1, %v1818_v5  ;;  %s1822_s18 = smov 80   ;;  %v616_v60 = vand.u32 127, %v615_v59  ;;  %v618_v61 = vshrl.u32 %v615_v59, 7  ;;  %vm629_vm4 = vcmask 1041409   ;;  %vm631_vm5 = vcmask 1042434  }
  0x36   : > { %s1570_s29 = sshll.u32 %s2089_s15, 3  ;;  %s1667_s30 = smul.u32 12, %s2089_s15  ;;  %1609 = vmatprep.subr.mxu1 %v1818_v5  ;;  %vm634_vm6 = vcmask 59392   ;;  %vm638_vm7 = vcmask 2048   ;;  %vm898_vm8 = vcmask 10248   ;;  %vm1158_vm9 = vcmask 18448  }
  0x37   : > { %s262_s8 = scalar_lea.vmem %s2077_s2, %s1570_s29  ;;  %v619_v63 = vsub.s32 %v616_v60, %v618_v61  ;;  %s1538_s20 = sshll.u32 %s2089_s15, 2  ;;  %vm1418_vm10 = vcmask 26648  }
  0x38   : > { %s253_s22 = scalar_lea.vmem %s2075_s0, %s1667_s30  ;;  %v1730_v0 = vld [vmem:[%s262_s8] sm:$0xff]   ;;  %s267_s25 = scalar_lea.vmem %s2078_s3, %s1538_s20 }
  0x39   : > { %1598 = vmatprep.subr.bf16.mxu0 %v1730_v0  ;;  %v1731_v1 = vld [vmem:[%s253_s22] sm:$0xff]   ;;  %v1732_v2 = vld [vmem:[%s253_s22 + $0x8] ss:$0 sps:$4 sm:$0xff]  }
  0x3a   : > { %1599 = vmatpush3.bf16.msra.mxu0 %v1730_v0  ;;  %1600 = vmatprep.mubr.msk.bf16.mxu0 %vm288_vm0, %v1731_v1 }
  0x3b   : > { %1614 = vmatprep.subr.mxu0 %v1818_v5 }
  0x3d   : > { %1601 = vmatmul.mubr.msk.bf16.vlgmr.msra.gmra.mrb[0].mxu0 %vm288_vm0, %v1732_v2 }
  0x3e   : > { %1616 = vmatprep.mubr.msk.f32.mxu0 %vm1819_vm1, %v1818_v5 }
  0x43   : > { %1615 = vmatpush3.xpose.msk.msra.mxu0 %vm288_vm0, %v1955_v3 }
  0x44   : > { %1624 = vmatprep.subr.mxu0 %v1818_v5 }
 0x110   : > { %v1602_v6 = vpop.f32.mrb[0].mxu0 }
 0x111   : > { %350 = vst.msk [vmem:[#allocation2 + $0x10] sm:$0xff] %vm347_vm2, %v1602_v6  ;;  %v329_v7 = vpop.f32.mrb[1].mxu0 }
 0x112   : > { %348 = vst.msk [vmem:[#allocation2] sm:$0xff] %vm347_vm2, %v329_v7  ;;  %v1603_v8 = vpop.f32.mrb[2].mxu0 }
 0x113   : > { %v332_v9 = vpop.f32.mrb[3].mxu0 }
 0x114   : > { %349 = vst.msk [vmem:[#allocation2 + $0x8] sm:$0xff] %vm347_vm2, %v332_v9 }
 0x118   : > { %v642_v10 = vld [vmem:[#allocation2 + $0x10] sm:$0xff] }
 0x119   : > { %794 = vrot.lane.b32.xlu1 %v642_v10, %s1820_s11  ;;  %1617 = vmatmul.mubr.msk.f32.vlgmr.msra.gmra.mrb[4].mxu0 %vm288_vm0, %v642_v10  ;;  %v640_v12 = vld [vmem:[#allocation2] sm:$0xff] }
 0x11a   : > { %644 = vrot.lane.b32.xlu0 %v640_v12, %s1820_s11  ;;  %1607 = vmatmul.mubr.msk.f32.vlgmr.msra.gmra.mrb[0].mxu1 %vm288_vm0, %v640_v12 }
 0x11b   : > { %1610 = vmatpush3.xpose.msk.msra.mxu1 %vm288_vm0, %v369_v11  ;;  %1611 = vmatprep.mubr.msk.f32.mxu1 %vm1819_vm1, %v1818_v5  ;;  %v641_v13 = vld [vmem:[#allocation2 + $0x8] sm:$0xff] }
 0x11c   : > { %1619 = vmatprep.subr.mxu1 %v1818_v5  ;;  %1625 = vmatpush3.xpose.msk.msra.mxu0 %vm288_vm0, %v369_v11 }
 0x11d   : > { %904 = vrot.lane.b32.xlu1 %v640_v12, %s1821_s12  ;;  %1626 = vmatprep.mubr.msk.f32.mxu0 %vm1819_vm1, %v1818_v5 }
 0x11e   : > { %719 = vrot.lane.b32.xlu0 %v641_v13, %s1820_s11  ;;  %1612 = vmatmul.mubr.msk.f32.vlgmr.msra.gmra.mrb[2].mxu1 %vm288_vm0, %v641_v13 }
 0x11f   : > { %1620 = vmatpush3.xpose.msk.msra.mxu1 %vm288_vm0, %v1958_v4  ;;  %1621 = vmatprep.mubr.msk.f32.mxu1 %vm1819_vm1, %v1818_v5 }
 0x120   : > { %1629 = vmatprep.subr.mxu1 %v1818_v5  ;;  %1634 = vmatprep.subr.mxu0 %v1818_v5 }
 0x121   : > { %1054 = vrot.lane.b32.xlu1 %v642_v10, %s1821_s12 }
 0x122   : > { %979 = vrot.lane.b32.xlu0 %v641_v13, %s1821_s12 }
 0x125   : > { %1239 = vrot.lane.b32.xlu1 %v641_v13, %s1822_s18 }
 0x126   : > { %1164 = vrot.lane.b32.xlu0 %v640_v12, %s1822_s18 }
 0x12a   : > { %1314 = vrot.lane.b32.xlu0 %v642_v10, %s1822_s18 }
 0x18b   : > { %v795_v14 = vpop.permute.xlu1 %794 }
 0x18c   : > { %v645_v15 = vpop.permute.xlu0 %644 }
 0x18d   : > { %1622 = vmatmul.mubr.msk.f32.vlgmr.msra.gmra.mrb[4].mxu1 %vm288_vm0, %v645_v15 }
 0x18e   : > { %1630 = vmatpush3.xpose.msk.msra.mxu1 %vm288_vm0, %v1955_v3  ;;  %1631 = vmatprep.mubr.msk.f32.mxu1 %vm1819_vm1, %v1818_v5 }
 0x18f   : > { %1639 = vmatprep.subr.mxu1 %v1818_v5  ;;  %v905_v16 = vpop.permute.xlu1 %904 }
 0x190   : > { %v720_v17 = vpop.permute.xlu0 %719 }
 0x191   : > { %1627 = vmatmul.mubr.msk.f32.vlgmr.msra.gmra.mrb[6].mxu0 %vm288_vm0, %v720_v17  ;;  %1632 = vmatmul.mubr.msk.f32.vlgmr.msra.gmra.mrb[6].mxu1 %vm288_vm0, %v795_v14 }
 0x192   : > { %1635 = vmatpush3.xpose.msk.msra.mxu0 %vm288_vm0, %v1958_v4  ;;  %1640 = vmatpush3.xpose.msk.msra.mxu1 %vm288_vm0, %v369_v11 }
 0x193   : > { %1636 = vmatprep.mubr.msk.f32.mxu0 %vm1819_vm1, %v1818_v5  ;;  %1644 = vmatprep.subr.mxu0 %v1818_v5  ;;  %v1055_v19 = vpop.permute.xlu1 %1054 }
 0x194   : > { %v980_v18 = vpop.permute.xlu0 %979  ;;  %1641 = vmatprep.mubr.msk.f32.mxu1 %vm1819_vm1, %v1818_v5  ;;  %1649 = vmatprep.subr.mxu1 %v1818_v5 }
 0x195   : > { %1637 = vmatmul.mubr.msk.f32.vlgmr.msra.gmra.mrb[8].mxu0 %vm288_vm0, %v905_v16  ;;  %1642 = vmatmul.mubr.msk.f32.vlgmr.msra.gmra.mrb[8].mxu1 %vm288_vm0, %v980_v18 }
 0x196   : > { %1645 = vmatpush3.xpose.msk.msra.mxu0 %vm288_vm0, %v1955_v3  ;;  %1650 = vmatpush3.xpose.msk.msra.mxu1 %vm288_vm0, %v1958_v4 }
 0x197   : > { %1646 = vmatprep.mubr.msk.f32.mxu0 %vm1819_vm1, %v1818_v5  ;;  %1654 = vmatprep.subr.mxu0 %v1818_v5  ;;  %v1240_v21 = vpop.permute.xlu1 %1239 }
 0x198   : > { %v1165_v20 = vpop.permute.xlu0 %1164  ;;  %1651 = vmatprep.mubr.msk.f32.mxu1 %vm1819_vm1, %v1818_v5  ;;  %1659 = vmatprep.subr.mxu1 %v1818_v5 }
 0x199   : > { %1647 = vmatmul.mubr.msk.f32.vlgmr.msra.gmra.mrb[10].mxu0 %vm288_vm0, %v1055_v19  ;;  %1652 = vmatmul.mubr.msk.f32.vlgmr.msra.gmra.mrb[10].mxu1 %vm288_vm0, %v1165_v20 }
 0x19a   : > { %1655 = vmatpush3.xpose.msk.msra.mxu0 %vm288_vm0, %v369_v11  ;;  %1660 = vmatpush3.xpose.msk.msra.mxu1 %vm288_vm0, %v1955_v3 }
 0x19b   : > { %1656 = vmatprep.mubr.msk.f32.mxu0 %vm1819_vm1, %v1818_v5  ;;  %1661 = vmatprep.mubr.msk.f32.mxu1 %vm1819_vm1, %v1818_v5 }
 0x19c   : > { %v1315_v22 = vpop.permute.xlu0 %1314 }
 0x19d   : > { %1657 = vmatmul.mubr.msk.f32.vlgmr.msra.gmra.mrb[12].mxu0 %vm288_vm0, %v1240_v21  ;;  %1662 = vmatmul.mubr.msk.f32.vlgmr.msra.gmra.mrb[12].mxu1 %vm288_vm0, %v1315_v22 }
 0x1ec   : > { %v598_v23 = vpop.f32.mrb[4].mxu0 }
 0x1ed   : > { %v446_v24 = vpop.f32.mrb[0].mxu1  ;;  %v1618_v25 = vpop.f32.mrb[5].mxu0  ;;  %v609_v26 = vsel %vm602_vm3, %v598_v23, -inf }
 0x1ee   : > { %v1608_v27 = vpop.f32.mrb[1].mxu1  ;;  %610 = vmax.xlane.f32.xlu0 %v609_v26  ;;  %v603_v28 = vsel %vm602_vm3, %v446_v24, -inf }
 0x1ef   : > { %604 = vmax.xlane.f32.xlu1 %v603_v28 }
 0x1f1   : > { %v522_v29 = vpop.f32.mrb[2].mxu1 }
 0x1f2   : > { %v1613_v30 = vpop.f32.mrb[3].mxu1  ;;  %v606_v31 = vsel %vm602_vm3, %v522_v29, -inf }
 0x1f3   : > { %607 = vmax.xlane.f32.xlu0 %v606_v31 }
 0x260   : > { %v714_v32 = vpop.f32.mrb[4].mxu1 }
 0x261   : > { %v1623_v33 = vpop.f32.mrb[5].mxu1  ;;  %v868_v34 = vsel %vm602_vm3, %v714_v32, -inf }
 0x262   : > { %869 = vmax.xlane.f32.xlu1 %v868_v34 }
 0x264   : > { %v789_v35 = vpop.f32.mrb[6].mxu0  ;;  %v864_v36 = vpop.f32.mrb[6].mxu1 }
 0x265   : > { %v1628_v37 = vpop.f32.mrb[7].mxu0  ;;  %v1633_v38 = vpop.f32.mrb[7].mxu1  ;;  %v871_v39 = vsel %vm602_vm3, %v789_v35, -inf  ;;  %v874_v40 = vsel %vm602_vm3, %v864_v36, -inf }
 0x266   : > { %872 = vmax.xlane.f32.xlu0 %v871_v39  ;;  %875 = vmax.xlane.f32.xlu1 %v874_v40 }
 0x268   : > { %v974_v41 = vpop.f32.mrb[8].mxu0  ;;  %v1049_v42 = vpop.f32.mrb[8].mxu1 }
 0x269   : > { %v1638_v43 = vpop.f32.mrb[9].mxu0  ;;  %v1643_v44 = vpop.f32.mrb[9].mxu1  ;;  %v1128_v45 = vsel %vm602_vm3, %v974_v41, -inf  ;;  %v1131_v46 = vsel %vm602_vm3, %v1049_v42, -inf }
 0x26a   : > { %1129 = vmax.xlane.f32.xlu0 %v1128_v45  ;;  %1132 = vmax.xlane.f32.xlu1 %v1131_v46 }
 0x26c   : > { %v1124_v47 = vpop.f32.mrb[10].mxu0  ;;  %v1234_v48 = vpop.f32.mrb[10].mxu1 }
 0x26d   : > { %v1648_v49 = vpop.f32.mrb[11].mxu0  ;;  %v1653_v50 = vpop.f32.mrb[11].mxu1  ;;  %v1134_v51 = vsel %vm602_vm3, %v1124_v47, -inf  ;;  %v1388_v52 = vsel %vm602_vm3, %v1234_v48, -inf }
 0x26e   : > { %1135 = vmax.xlane.f32.xlu0 %v1134_v51  ;;  %1389 = vmax.xlane.f32.xlu1 %v1388_v52 }
 0x270   : > { %v1309_v53 = vpop.f32.mrb[12].mxu0  ;;  %v1384_v54 = vpop.f32.mrb[12].mxu1 }
 0x271   : > { %v1658_v55 = vpop.f32.mrb[13].mxu0  ;;  %v1663_v56 = vpop.f32.mrb[13].mxu1  ;;  %v1391_v57 = vsel %vm602_vm3, %v1309_v53, -inf  ;;  %v1394_v58 = vsel %vm602_vm3, %v1384_v54, -inf }
 0x272   : > { %1392 = vmax.xlane.f32.xlu0 %v1391_v57  ;;  %1395 = vmax.xlane.f32.xlu1 %v1394_v58 }
 0x27b   : > { %v611_v62 = vpop.xlane.xlu0 %610 }
 0x27c   : > { %v605_v0 = vpop.xlane.xlu1 %604  ;;  %v628_v4 = vrot.slane %v611_v62, %v619_v63 }
 0x27d   : > { %v620_v2 = vrot.slane %v605_v0, %v619_v63 }
 0x280   : > { %v608_v1 = vpop.xlane.xlu0 %607 }
 0x281   : > { %v624_v3 = vrot.slane %v608_v1, %v619_v63 }
 0x283   : > { %v630_v5 = vsel %vm629_vm4, %v624_v3, %v620_v2 }
 0x284   : > { %v632_v6 = vsel %vm631_vm5, %v628_v4, %v630_v5 }
 0x285   : > { %v635_v7 = vsel %vm634_vm6, %v632_v6, -inf }
 0x286   : > { %636 = vmax.xlane.f32.xlu0 %v635_v7 }
 0x2ef   : > { %v870_v8 = vpop.xlane.xlu1 %869 }
 0x2f0   : > { %v883_v11 = vrot.slane %v870_v8, %v619_v63 }
 0x2f3   : > { %v873_v9 = vpop.xlane.xlu0 %872  ;;  %v876_v10 = vpop.xlane.xlu1 %875 }
 0x2f4   : > { %v887_v12 = vrot.slane %v873_v9, %v619_v63  ;;  %v891_v13 = vrot.slane %v876_v10, %v619_v63 }
 0x2f6   : > { %v892_v14 = vsel %vm629_vm4, %v887_v12, %v883_v11 }
 0x2f7   : > { %v1130_v15 = vpop.xlane.xlu0 %1129  ;;  %v1133_v16 = vpop.xlane.xlu1 %1132  ;;  %v893_v17 = vsel %vm631_vm5, %v891_v13, %v892_v14 }
 0x2f8   : > { %v895_v18 = vsel %vm634_vm6, %v893_v17, -inf  ;;  %v1143_v19 = vrot.slane %v1130_v15, %v619_v63  ;;  %v1147_v20 = vrot.slane %v1133_v16, %v619_v63 }
 0x2f9   : > { %896 = vmax.xlane.f32.xlu1 %v895_v18 }
 0x2fa   : > { %v1152_v24 = vsel %vm629_vm4, %v1147_v20, %v1143_v19 }
 0x2fb   : > { %v1136_v21 = vpop.xlane.xlu0 %1135  ;;  %v1390_v22 = vpop.xlane.xlu1 %1389 }
 0x2fc   : > { %v1151_v23 = vrot.slane %v1136_v21, %v619_v63  ;;  %v1403_v29 = vrot.slane %v1390_v22, %v619_v63 }
 0x2fe   : > { %v1153_v25 = vsel %vm631_vm5, %v1151_v23, %v1152_v24 }
 0x2ff   : > { %v1393_v26 = vpop.xlane.xlu0 %1392  ;;  %v1396_v27 = vpop.xlane.xlu1 %1395  ;;  %v1155_v28 = vsel %vm634_vm6, %v1153_v25, -inf }
 0x300   : > { %v1407_v30 = vrot.slane %v1393_v26, %v619_v63  ;;  %v1411_v31 = vrot.slane %v1396_v27, %v619_v63  ;;  %1156 = vmax.xlane.f32.xlu0 %v1155_v28 }
 0x302   : > { %v1412_v32 = vsel %vm629_vm4, %v1407_v30, %v1403_v29 }
 0x303   : > { %v1413_v33 = vsel %vm631_vm5, %v1411_v31, %v1412_v32 }
 0x304   : > { %v1415_v34 = vsel %vm634_vm6, %v1413_v33, -inf }
 0x305   : > { %1416 = vmax.xlane.f32.xlu1 %v1415_v34 }
 0x313   : > { %v637_v35 = vpop.xlane.xlu0 %636 }
 0x314   : > { %639 = vst.msk [vmem:[%s267_s25] sm:$0x7] %vm638_vm7, %v637_v35 }
 0x386   : > { %v897_v36 = vpop.xlane.xlu1 %896 }
 0x387   : > { %899 = vst.msk [vmem:[%s267_s25] sm:$0x7] %vm898_vm8, %v897_v36 }
 0x38d   : > { %v1157_v37 = vpop.xlane.xlu0 %1156 }
 0x38e   : > { %1159 = vst.msk [vmem:[%s267_s25] sm:$0x7] %vm1158_vm9, %v1157_v37 }
 0x392   : > { %v1417_v38 = vpop.xlane.xlu1 %1416 }
 0x393   : > { %1419 = vst.msk [vmem:[%s267_s25] sm:$0x7] %vm1418_vm10, %v1417_v38 }
 0x394 PF: > { %s16_s17 = sadd.s32 1, %s1813_s17   ;;  %s2081_s12 = smov %s1797_s13 }
 0x395   : > { %p13_p7 = scmp.ge.s32.totalorder %s16_s17, 4   ;;  %s2082_s13 = smov %s1801_s14 }
 0x396   : > { %s2083_s14 = smov %s1888_s23  ;;  %s2084_s15 = smov %s1809_s16 }
 0x397   : > { %s2085_s16 = smov %s2087_s19  ;;  %15 = sbr.rel (!%p13_p7) target bundleno = 4 (0x4), region = 90 }
 0x39e   :  { %1439 = vsyncpa [#allocation4], 1 }
 0x39f   :  { %1441 = vsyncpa [#allocation4 + $0x1], 1 }

</bundles_post_ra>
